<compile_context>
chip_gen: v6e
topology: v6e:2x2x1
jax: 0.10.0
libtpu: 0.0.40
codegen_flags: <defaults>
</compile_context>

<pallas_src>
import functools

import jax
import jax.numpy as jnp
from jax.experimental import pallas as pl
from jax.experimental.pallas import tpu as pltpu


# ------------------------------- helpers ------------------------------------


def _round_up(x, m):
    return ((x + m - 1) // m) * m


def _vmem_capacity_bytes():
    try:
        return int(pltpu.get_tpu_info().vmem_capacity_bytes)
    except Exception:
        return 64 * 1024 * 1024  # conservative (v7x-sized) fallback


# Row tiles are multiples of 16 (bf16 sublane packing).
_TM_LADDER = (1024, 512, 256, 128, 64, 32, 16)


def _plan_tiles(n, nfeat, hpad, cpad, ep, ecp, vmem_cap):
    """One shared VMEM budget decides (a) whether adj is fully VMEM-resident,
    (b) the adj row tile TM and (c) vmem_limit_bytes, so they can never
    disagree (fixes the v7x 64 MiB accounting issue)."""
    adj_bytes = 2                      # adj is held / streamed as bf16
    wmax = max(hpad, cpad)
    margin = 8 << 20                   # compiler scratch + per-step temporaries

    def fixed_bytes(npad):
        b = 0
        b += 2 * npad * nfeat * 4                                           # x (dbl-buf)
        b += 2 * 4 * (nfeat * hpad + hpad + hpad * cpad + cpad + cpad * cpad)  # weights
        b += 2 * 4 * (ep + ecp)                                             # u, v indices
        b += 2 * 4 * ep * ecp                                               # output
        b += npad * wmax * 2                                                # zw_s (bf16)
        b += npad * wmax * 4                                                # h_s  (f32)
        b += npad * wmax * 4                                                # one-off matmul temp
        b += 4 * (ep + ecp) * npad                                          # one-hot temporaries
        return b

    n16 = _round_up(n, 16)
    cands = []
    for tm in _TM_LADDER:
        if tm > n16:
            continue
        npad = _round_up(n, tm)
        # avoid >12.5% row-padding waste (tm=16 always allowed: zero waste)
        if tm != 16 and (npad - n16) * 8 > n16:
            continue
        cands.append((tm, npad))
    if not cands:
        cands = [(16, n16)]

    # Option 1: adj fully VMEM-resident -> one HBM pass over the O(N^2) tensor.
    for tm, npad in cands:
        need = 2 * npad * npad * adj_bytes + fixed_bytes(npad) + margin
        if need <= vmem_cap:
            return tm, npad, True, need
    # Option 2: double-buffered (TM, N) adj row tiles, largest TM first
    # (>=512 reaches ~85% of HBM roofline vs ~63% at 256).
    for tm, npad in cands:
        need = 2 * tm * npad * adj_bytes + fixed_bytes(npad) + margin
        if need <= vmem_cap:
            return tm, npad, False, need
    tm, npad = cands[-1]
    need = 2 * tm * npad * adj_bytes + fixed_bytes(npad) + margin
    return tm, npad, False, need


# ----------------------------- fused kernel ---------------------------------


def linkpred_fused_kernel(
    u_ref, v_ref,                                                # VMEM int32 indices
    x_ref, adj_ref, w1_ref, b1_ref, w2_ref, b2_ref, wet_ref,     # VMEM inputs
    o_ref,                                                       # VMEM output
    zw_s, h_s,                                                   # VMEM scratch (aliased)
    *, tm, hpad, cpad, activation, adj_resident):
    p = pl.program_id(0)      # 0: layer 1, 1: layer 2 + edge scoring
    i = pl.program_id(1)      # adj row-tile index
    nt = pl.num_programs(1)
    row0 = pl.multiple_of(i * tm, tm)

    def adj_tile():
        if adj_resident:
            # adj lives fully in VMEM; slice the current row tile.
            return adj_ref[pl.ds(row0, tm), :]
        return adj_ref[...]

    # ---- once, before layer 1: xw1 = x @ W1 (f32 compute, stored bf16) -----
    @pl.when((p == 0) & (i == 0))
    def _():
        xw1 = jnp.dot(x_ref[...], w1_ref[...],
                      preferred_element_type=jnp.float32)
        zw_s[:, :hpad] = xw1.astype(jnp.bfloat16)

    # ---- layer 1, per adj row tile: h1 = relu(adj @ xw1 + b1) --------------
    @pl.when(p == 0)
    def _():
        h1 = jnp.dot(adj_tile(), zw_s[:, :hpad],
                     preferred_element_type=jnp.float32) + b1_ref[...]
        if activation:
            h1 = jnp.maximum(h1, 0.0)
        # dropout: identity at inference
        h_s[pl.ds(row0, tm), :hpad] = h1

    # ---- phase-0 tail: z = h1 @ W2 (hoisted; xw1 is dead, reuse its buffer) -
    @pl.when((p == 0) & (i == nt - 1))
    def _():
        z = jnp.dot(h_s[:, :hpad], w2_ref[...],
                    preferred_element_type=jnp.float32)
        zw_s[:, :cpad] = z.astype(jnp.bfloat16)

    # ---- layer 2, per adj row tile: h2 = adj @ z + b2 (h1 is dead) ---------
    @pl.when(p == 1)
    def _():
        h2 = jnp.dot(adj_tile(), zw_s[:, :cpad],
                     preferred_element_type=jnp.float32) + b2_ref[...]
        h_s[pl.ds(row0, tm), :cpad] = h2

    # ---- last step: one-hot MXU gather of h2[u]/h2[v], score, sigmoid ------
    @pl.when((p == 1) & (i == nt - 1))
    def _():
        npad = h_s.shape[0]
        h2 = h_s[:, :cpad]

        iota_u = jax.lax.broadcasted_iota(jnp.int32, (u_ref.shape[0], npad), 1)
        onehot_u = (iota_u == u_ref[...]).astype(jnp.float32)
        hu = jnp.dot(onehot_u, h2, preferred_element_type=jnp.float32)

        iota_v = jax.lax.broadcasted_iota(jnp.int32, (v_ref.shape[0], npad), 1)
        onehot_v = (iota_v == v_ref[...]).astype(jnp.float32)
        hv = jnp.dot(onehot_v, h2, preferred_element_type=jnp.float32)

        # (h2[u] @ W_edge^T) @ h2[v]^T ; W_edge was pre-transposed host-side,
        # the second contraction uses dot_general dimension_numbers (no .T).
        # (Minor: transposed operand is the v side; only matters for huge E.)
        t = jnp.dot(hu, wet_ref[...], preferred_element_type=jnp.float32)
        scores = jax.lax.dot_general(
            t, hv,
            dimension_numbers=(((1,), (1,)), ((), ())),
            preferred_element_type=jnp.float32)
        # sigmoid: EUP exp + EUP approx reciprocal
        o_ref[...] = pl.reciprocal(1.0 + jnp.exp(-scores),
                                   approx=True).astype(o_ref.dtype)


# ------------------------------ wrapper --------------------------------------


def linkpred_forward(u, v, x, adj, params, activation=True):
    n, nfeat = x.shape
    nhid = params["w1"].shape[1]
    nclass = params["w2"].shape[1]
    eu, ev = int(u.shape[0]), int(v.shape[0])

    # Lane-dense padded widths (zero padding is exact: padded columns of h1/h2
    # are 0 and padded W rows/cols are 0, so real scores are unchanged).
    hpad = _round_up(nhid, 128)
    cpad = _round_up(nclass, 128)
    wmax = max(hpad, cpad)
    ep = _round_up(eu, 8)        # output rows (sublane aligned)
    ecp = _round_up(ev, 128)     # output cols (lane dense, unmasked stores)

    vmem_cap = _vmem_capacity_bytes()
    tm, npad, adj_resident, need = _plan_tiles(
        n, nfeat, hpad, cpad, ep, ecp, vmem_cap)
    assert npad % tm == 0
    nt = npad // tm
    vmem_limit = int(min(vmem_cap, max(need, 32 << 20)))

    f32 = jnp.float32
    # Pad node dimension to a multiple of TM (zero rows/cols: exact).
    x_p = jnp.zeros((npad, nfeat), f32).at[:n, :].set(x.astype(f32))
    adj_p = jnp.zeros((npad, npad), f32).at[:n, :n].set(adj.astype(f32))
    # Stream/hold adj as bf16: halves the dominant HBM traffic, native bf16 MXU.
    adj_bf = adj_p.astype(jnp.bfloat16)

    w1p = jnp.zeros((nfeat, hpad), f32).at[:, :nhid].set(params["w1"].astype(f32))
    b1p = jnp.zeros((1, hpad), f32).at[0, :nhid].set(params["b1"].astype(f32))
    w2p = jnp.zeros((hpad, cpad), f32).at[:nhid, :nclass].set(params["w2"].astype(f32))
    b2p = jnp.zeros((1, cpad), f32).at[0, :nclass].set(params["b2"].astype(f32))
    # Pre-transpose W_edge host-side ([out,in] -> [in,out]); no XLU transpose
    # inside the kernel.
    wetp = jnp.zeros((cpad, cpad), f32).at[:nclass, :nclass].set(
        params["w_edge"].astype(f32).T)

    # Endpoint indices as small VMEM int32 columns (one-hot MXU gather inside).
    u_p = jnp.zeros((ep, 1), jnp.int32).at[:eu, 0].set(u.astype(jnp.int32))
    v_p = jnp.zeros((ecp, 1), jnp.int32).at[:ev, 0].set(v.astype(jnp.int32))

    kernel = functools.partial(
        linkpred_fused_kernel, tm=tm, hpad=hpad, cpad=cpad,
        activation=bool(activation), adj_resident=adj_resident)

    if adj_resident:
        # Constant index map: adj is DMA'd from HBM once and stays in VMEM.
        adj_spec = pl.BlockSpec((npad, npad), lambda p, i: (0, 0))
    else:
        # Double-buffered (TM, N) row tiles, re-streamed once per phase.
        adj_spec = pl.BlockSpec((tm, npad), lambda p, i: (i, 0))

    out_padded = pl.pallas_call(
        kernel,
        out_shape=jax.ShapeDtypeStruct((ep, ecp), jnp.float32),
        grid_spec=pltpu.PrefetchScalarGridSpec(
            num_scalar_prefetch=0,
            grid=(2, nt),                     # (phase, adj row tile)
            in_specs=[
                pl.BlockSpec((ep, 1), lambda p, i: (0, 0)),          # u indices
                pl.BlockSpec((ecp, 1), lambda p, i: (0, 0)),         # v indices
                pl.BlockSpec((npad, nfeat), lambda p, i: (0, 0)),    # x
                adj_spec,                                            # adj (bf16)
                pl.BlockSpec((nfeat, hpad), lambda p, i: (0, 0)),    # W1
                pl.BlockSpec((1, hpad), lambda p, i: (0, 0)),        # b1
                pl.BlockSpec((hpad, cpad), lambda p, i: (0, 0)),     # W2
                pl.BlockSpec((1, cpad), lambda p, i: (0, 0)),        # b2
                pl.BlockSpec((cpad, cpad), lambda p, i: (0, 0)),     # W_edge^T
            ],
            out_specs=pl.BlockSpec((ep, ecp), lambda p, i: (0, 0)),
            scratch_shapes=[
                pltpu.VMEM((npad, wmax), jnp.bfloat16),  # zw_s: xw1 then z
                pltpu.VMEM((npad, wmax), jnp.float32),   # h_s : h1  then h2
            ],
        ),
        compiler_params=pltpu.CompilerParams(
            # Phase 1 depends on ALL of phase 0's VMEM-resident state, so the
            # grid runs sequentially on one TensorCore.
            dimension_semantics=("arbitrary", "arbitrary"),
            vmem_limit_bytes=vmem_limit,
        ),
    )(u_p, v_p, x_p, adj_bf, w1p, b1p, w2p, b2p, wetp)

    return out_padded[:eu, :ev]


# ------------------------------ reference ------------------------------------


def linkpred_reference(u, v, x, adj, params, activation=True):
    h = adj @ (x @ params["w1"]) + params["b1"]
    if activation:
        h = jnp.maximum(h, 0.0)
    # dropout: identity in eval mode
    h = adj @ (h @ params["w2"]) + params["b2"]
    logits = (h[u] @ params["w_edge"].T) @ h[v].T
    return 1.0 / (1.0 + jnp.exp(-logits))


# --------------------------------- main ---------------------------------------


if __name__ == "__main__":
    N = 64        # nodes
    NFEAT = 32
    NHID = 32
    NCLASS = 16
    E = 8         # number of endpoints in u and in v (output is E x E)

    key = jax.random.PRNGKey(0)
    k = jax.random.split(key, 9)

    x = jax.random.normal(k[0], (N, NFEAT), dtype=jnp.float32)
    # symmetric, roughly row-normalized dense adjacency
    a = jax.random.uniform(k[1], (N, N), dtype=jnp.float32)
    adj = (a + a.T) * 0.5 / N

    params = {
        "w1": jax.random.normal(k[2], (NFEAT, NHID), dtype=jnp.float32) * 0.1,
        "b1": jax.random.normal(k[3], (NHID,), dtype=jnp.float32) * 0.1,
        "w2": jax.random.normal(k[4], (NHID, NCLASS), dtype=jnp.float32) * 0.1,
        "b2": jax.random.normal(k[5], (NCLASS,), dtype=jnp.float32) * 0.1,
        # PyTorch nn.Linear(nclass, nclass, bias=False) weight layout: [out, in]
        "w_edge": jax.random.normal(k[6], (NCLASS, NCLASS), dtype=jnp.float32) * 0.1,
    }

    u = jax.random.randint(k[7], (E,), 0, N)
    v = jax.random.randint(k[8], (E,), 0, N)

    out = linkpred_forward(u, v, x, adj, params, activation=True)
    out = jax.block_until_ready(out)

    ref = linkpred_reference(u, v, x, adj, params, activation=True)
    assert out.shape == (E, E), out.shape
    # bf16 adj stream + approx reciprocal: compare against f32 reference with a
    # loosened tolerance (expected ~1e-3-level deviation at these scales).
    assert jnp.allclose(out, ref, atol=1e-2, rtol=1e-2), (out, ref)

    print("KERNEL_OK")
</pallas_src>

<mosaic_0001>
module attributes {stable_mosaic.version = 11 : i64} {
  func.func @linkpred_fused_kernel(%arg0: i32, %arg1: i32, %arg2: memref<8x1xi32, #tpu.memory_space<vmem>>, %arg3: memref<128x1xi32, #tpu.memory_space<vmem>>, %arg4: memref<64x32xf32, #tpu.memory_space<vmem>>, %arg5: memref<64x64xbf16, #tpu.memory_space<vmem>>, %arg6: memref<32x128xf32, #tpu.memory_space<vmem>>, %arg7: memref<1x128xf32, #tpu.memory_space<vmem>>, %arg8: memref<128x128xf32, #tpu.memory_space<vmem>>, %arg9: memref<1x128xf32, #tpu.memory_space<vmem>>, %arg10: memref<128x128xf32, #tpu.memory_space<vmem>>, %arg11: memref<8x128xf32, #tpu.memory_space<vmem>>, %arg12: memref<64x128xbf16, #tpu.memory_space<vmem>>, %arg13: memref<64x128xf32, #tpu.memory_space<vmem>>) attributes {dimension_semantics = [#tpu.dimension_semantics<arbitrary>, #tpu.dimension_semantics<arbitrary>], iteration_bounds = array<i64: 2, 1>, scalar_prefetch = 0 : i64, scratch_operands = 2 : i64, tpu.core_type = #tpu.core_type<tc>, window_params = [{pipeline_mode = #tpu.pipeline_mode<synchronous>, transform_indices = @transform_0, window_bounds = array<i64: 8, 1>}, {pipeline_mode = #tpu.pipeline_mode<synchronous>, transform_indices = @transform_1, window_bounds = array<i64: 128, 1>}, {pipeline_mode = #tpu.pipeline_mode<synchronous>, transform_indices = @transform_2, window_bounds = array<i64: 64, 32>}, {pipeline_mode = #tpu.pipeline_mode<synchronous>, transform_indices = @transform_3, window_bounds = array<i64: 64, 64>}, {pipeline_mode = #tpu.pipeline_mode<synchronous>, transform_indices = @transform_4, window_bounds = array<i64: 32, 128>}, {pipeline_mode = #tpu.pipeline_mode<synchronous>, transform_indices = @transform_5, window_bounds = array<i64: 1, 128>}, {pipeline_mode = #tpu.pipeline_mode<synchronous>, transform_indices = @transform_6, window_bounds = array<i64: 128, 128>}, {pipeline_mode = #tpu.pipeline_mode<synchronous>, transform_indices = @transform_7, window_bounds = array<i64: 1, 128>}, {pipeline_mode = #tpu.pipeline_mode<synchronous>, transform_indices = @transform_8, window_bounds = array<i64: 128, 128>}, {pipeline_mode = #tpu.pipeline_mode<synchronous>, transform_indices = @transform_9, window_bounds = array<i64: 8, 128>}]} {
    %c64_i32 = arith.constant 64 : i32
    %0 = arith.muli %arg1, %c64_i32 : i32
    %1 = tpu.assume_multiple %0, 64 : i32
    %c0_i32 = arith.constant 0 : i32
    %2 = arith.cmpi eq, %arg0, %c0_i32 : i32
    %c0_i32_0 = arith.constant 0 : i32
    %3 = arith.cmpi eq, %arg1, %c0_i32_0 : i32
    %4 = arith.andi %2, %3 : i1
    %5 = arith.extui %4 : i1 to i32
    %c0_i32_1 = arith.constant 0 : i32
    %6 = arith.cmpi ne, %5, %c0_i32_1 : i32
    scf.if %6 {
      %c0 = arith.constant 0 : index
      %c0_11 = arith.constant 0 : index
      %23 = vector.load %arg4[%c0, %c0_11] : memref<64x32xf32, #tpu.memory_space<vmem>>, vector<64x32xf32>
      %c0_12 = arith.constant 0 : index
      %c0_13 = arith.constant 0 : index
      %24 = vector.load %arg6[%c0_12, %c0_13] : memref<32x128xf32, #tpu.memory_space<vmem>>, vector<32x128xf32>
      %cst = arith.constant dense<0.000000e+00> : vector<64x128xf32>
      %25 = tpu.matmul %23, %24, %cst {dimension_numbers = #tpu.dot_dimension_numbers<[1], [0], [0], [1], [0, 0, 1, 1], [], []>} : vector<64x32xf32>, vector<32x128xf32>, vector<64x128xf32> -> vector<64x128xf32>
      %26 = arith.truncf %25 : vector<64x128xf32> to vector<64x128xbf16>
      %c0_14 = arith.constant 0 : index
      %c0_15 = arith.constant 0 : index
      %27 = vector.load %arg12[%c0_14, %c0_15] : memref<64x128xbf16, #tpu.memory_space<vmem>>, vector<64x128xbf16>
      tpu.vector_store %arg12[%c0_14, %c0_15], %26 {strides = array<i32>} : memref<64x128xbf16, #tpu.memory_space<vmem>>, vector<64x128xbf16>,
    } else {
    }
    %c0_i32_2 = arith.constant 0 : i32
    %7 = arith.cmpi eq, %arg0, %c0_i32_2 : i32
    %8 = arith.extui %7 : i1 to i32
    %c0_i32_3 = arith.constant 0 : i32
    %9 = arith.cmpi ne, %8, %c0_i32_3 : i32
    scf.if %9 {
      %23 = arith.index_cast %1 : i32 to index
      %c0 = arith.constant 0 : index
      %24 = vector.load %arg5[%23, %c0] : memref<64x64xbf16, #tpu.memory_space<vmem>>, vector<64x64xbf16>
      %c0_11 = arith.constant 0 : index
      %c0_12 = arith.constant 0 : index
      %25 = vector.load %arg12[%c0_11, %c0_12] : memref<64x128xbf16, #tpu.memory_space<vmem>>, vector<64x128xbf16>
      %cst = arith.constant dense<0.000000e+00> : vector<64x128xf32>
      %26 = tpu.matmul %24, %25, %cst {dimension_numbers = #tpu.dot_dimension_numbers<[1], [0], [0], [1], [0, 0, 1, 1], [], []>} : vector<64x64xbf16>, vector<64x128xbf16>, vector<64x128xf32> -> vector<64x128xf32>
      %c0_13 = arith.constant 0 : index
      %c0_14 = arith.constant 0 : index
      %27 = vector.load %arg7[%c0_13, %c0_14] : memref<1x128xf32, #tpu.memory_space<vmem>>, vector<1x128xf32>
      %28 = vector.broadcast %27 : vector<1x128xf32> to vector<64x128xf32>
      %29 = arith.addf %26, %28 : vector<64x128xf32>
      %cst_15 = arith.constant 0.000000e+00 : f32
      %30 = vector.broadcast %cst_15 : f32 to vector<64x128xf32>
      %31 = arith.maximumf %29, %30 : vector<64x128xf32>
      %32 = arith.index_cast %1 : i32 to index
      %c0_16 = arith.constant 0 : index
      %33 = vector.load %arg13[%32, %c0_16] : memref<64x128xf32, #tpu.memory_space<vmem>>, vector<64x128xf32>
      tpu.vector_store %arg13[%32, %c0_16], %31 {strides = array<i32>} : memref<64x128xf32, #tpu.memory_space<vmem>>, vector<64x128xf32>,
    } else {
    }
    %c0_i32_4 = arith.constant 0 : i32
    %10 = arith.cmpi eq, %arg0, %c0_i32_4 : i32
    %c0_i32_5 = arith.constant 0 : i32
    %11 = arith.cmpi eq, %arg1, %c0_i32_5 : i32
    %12 = arith.andi %10, %11 : i1
    %13 = arith.extui %12 : i1 to i32
    %c0_i32_6 = arith.constant 0 : i32
    %14 = arith.cmpi ne, %13, %c0_i32_6 : i32
    scf.if %14 {
      %c0 = arith.constant 0 : index
      %c0_11 = arith.constant 0 : index
      %23 = vector.load %arg13[%c0, %c0_11] : memref<64x128xf32, #tpu.memory_space<vmem>>, vector<64x128xf32>
      %c0_12 = arith.constant 0 : index
      %c0_13 = arith.constant 0 : index
      %24 = vector.load %arg8[%c0_12, %c0_13] : memref<128x128xf32, #tpu.memory_space<vmem>>, vector<128x128xf32>
      %cst = arith.constant dense<0.000000e+00> : vector<64x128xf32>
      %25 = tpu.matmul %23, %24, %cst {dimension_numbers = #tpu.dot_dimension_numbers<[1], [0], [0], [1], [0, 0, 1, 1], [], []>} : vector<64x128xf32>, vector<128x128xf32>, vector<64x128xf32> -> vector<64x128xf32>
      %26 = arith.truncf %25 : vector<64x128xf32> to vector<64x128xbf16>
      %c0_14 = arith.constant 0 : index
      %c0_15 = arith.constant 0 : index
      %27 = vector.load %arg12[%c0_14, %c0_15] : memref<64x128xbf16, #tpu.memory_space<vmem>>, vector<64x128xbf16>
      tpu.vector_store %arg12[%c0_14, %c0_15], %26 {strides = array<i32>} : memref<64x128xbf16, #tpu.memory_space<vmem>>, vector<64x128xbf16>,
    } else {
    }
    %c1_i32 = arith.constant 1 : i32
    %15 = arith.cmpi eq, %arg0, %c1_i32 : i32
    %16 = arith.extui %15 : i1 to i32
    %c0_i32_7 = arith.constant 0 : i32
    %17 = arith.cmpi ne, %16, %c0_i32_7 : i32
    scf.if %17 {
      %23 = arith.index_cast %1 : i32 to index
      %c0 = arith.constant 0 : index
      %24 = vector.load %arg5[%23, %c0] : memref<64x64xbf16, #tpu.memory_space<vmem>>, vector<64x64xbf16>
      %c0_11 = arith.constant 0 : index
      %c0_12 = arith.constant 0 : index
      %25 = vector.load %arg12[%c0_11, %c0_12] : memref<64x128xbf16, #tpu.memory_space<vmem>>, vector<64x128xbf16>
      %cst = arith.constant dense<0.000000e+00> : vector<64x128xf32>
      %26 = tpu.matmul %24, %25, %cst {dimension_numbers = #tpu.dot_dimension_numbers<[1], [0], [0], [1], [0, 0, 1, 1], [], []>} : vector<64x64xbf16>, vector<64x128xbf16>, vector<64x128xf32> -> vector<64x128xf32>
      %c0_13 = arith.constant 0 : index
      %c0_14 = arith.constant 0 : index
      %27 = vector.load %arg9[%c0_13, %c0_14] : memref<1x128xf32, #tpu.memory_space<vmem>>, vector<1x128xf32>
      %28 = vector.broadcast %27 : vector<1x128xf32> to vector<64x128xf32>
      %29 = arith.addf %26, %28 : vector<64x128xf32>
      %30 = arith.index_cast %1 : i32 to index
      %c0_15 = arith.constant 0 : index
      %31 = vector.load %arg13[%30, %c0_15] : memref<64x128xf32, #tpu.memory_space<vmem>>, vector<64x128xf32>
      tpu.vector_store %arg13[%30, %c0_15], %29 {strides = array<i32>} : memref<64x128xf32, #tpu.memory_space<vmem>>, vector<64x128xf32>,
    } else {
    }
    %c1_i32_8 = arith.constant 1 : i32
    %18 = arith.cmpi eq, %arg0, %c1_i32_8 : i32
    %c0_i32_9 = arith.constant 0 : i32
    %19 = arith.cmpi eq, %arg1, %c0_i32_9 : i32
    %20 = arith.andi %18, %19 : i1
    %21 = arith.extui %20 : i1 to i32
    %c0_i32_10 = arith.constant 0 : i32
    %22 = arith.cmpi ne, %21, %c0_i32_10 : i32
    scf.if %22 {
      %c0 = arith.constant 0 : index
      %c0_11 = arith.constant 0 : index
      %23 = vector.load %arg13[%c0, %c0_11] : memref<64x128xf32, #tpu.memory_space<vmem>>, vector<64x128xf32>
      %24 = tpu.iota {dimensions = array<i32: 1>} : vector<8x64xi32>
      %c0_12 = arith.constant 0 : index
      %c0_13 = arith.constant 0 : index
      %25 = vector.load %arg2[%c0_12, %c0_13] : memref<8x1xi32, #tpu.memory_space<vmem>>, vector<8x1xi32>
      %26 = vector.broadcast %25 : vector<8x1xi32> to vector<8x64xi32>
      %27 = arith.cmpi eq, %24, %26 : vector<8x64xi32>
      %28 = arith.extui %27 : vector<8x64xi1> to vector<8x64xi32>
      %29 = arith.sitofp %28 : vector<8x64xi32> to vector<8x64xf32>
      %cst = arith.constant dense<0.000000e+00> : vector<8x128xf32>
      %30 = tpu.matmul %29, %23, %cst {dimension_numbers = #tpu.dot_dimension_numbers<[1], [0], [0], [1], [0, 0, 1, 1], [], []>} : vector<8x64xf32>, vector<64x128xf32>, vector<8x128xf32> -> vector<8x128xf32>
      %31 = tpu.iota {dimensions = array<i32: 1>} : vector<128x64xi32>
      %c0_14 = arith.constant 0 : index
      %c0_15 = arith.constant 0 : index
      %32 = vector.load %arg3[%c0_14, %c0_15] : memref<128x1xi32, #tpu.memory_space<vmem>>, vector<128x1xi32>
      %33 = vector.broadcast %32 : vector<128x1xi32> to vector<128x64xi32>
      %34 = arith.cmpi eq, %31, %33 : vector<128x64xi32>
      %35 = arith.extui %34 : vector<128x64xi1> to vector<128x64xi32>
      %36 = arith.sitofp %35 : vector<128x64xi32> to vector<128x64xf32>
      %cst_16 = arith.constant dense<0.000000e+00> : vector<128x128xf32>
      %37 = tpu.matmul %36, %23, %cst_16 {dimension_numbers = #tpu.dot_dimension_numbers<[1], [0], [0], [1], [0, 0, 1, 1], [], []>} : vector<128x64xf32>, vector<64x128xf32>, vector<128x128xf32> -> vector<128x128xf32>
      %c0_17 = arith.constant 0 : index
      %c0_18 = arith.constant 0 : index
      %38 = vector.load %arg10[%c0_17, %c0_18] : memref<128x128xf32, #tpu.memory_space<vmem>>, vector<128x128xf32>
      %cst_19 = arith.constant dense<0.000000e+00> : vector<8x128xf32>
      %39 = tpu.matmul %30, %38, %cst_19 {dimension_numbers = #tpu.dot_dimension_numbers<[1], [0], [0], [1], [0, 0, 1, 1], [], []>} : vector<8x128xf32>, vector<128x128xf32>, vector<8x128xf32> -> vector<8x128xf32>
      %cst_20 = arith.constant dense<0.000000e+00> : vector<8x128xf32>
      %40 = tpu.matmul %39, %37, %cst_20 {dimension_numbers = #tpu.dot_dimension_numbers<[1], [1], [0], [0], [0, 0, 1, 0], [], []>} : vector<8x128xf32>, vector<128x128xf32>, vector<8x128xf32> -> vector<8x128xf32>
      %cst_21 = arith.constant 0.000000e+00 : f32
      %41 = vector.broadcast %cst_21 : f32 to vector<8x128xf32>
      %42 = arith.subf %41, %40 : vector<8x128xf32>
      %43 = math.exp %42 : vector<8x128xf32>
      %cst_22 = arith.constant 1.000000e+00 : f32
      %44 = vector.broadcast %cst_22 : f32 to vector<8x128xf32>
      %45 = arith.addf %44, %43 : vector<8x128xf32>
      %46 = tpu.reciprocal %45 {approx = true} : vector<8x128xf32> -> vector<8x128xf32>
      %c0_23 = arith.constant 0 : index
      %c0_24 = arith.constant 0 : index
      %47 = vector.load %arg11[%c0_23, %c0_24] : memref<8x128xf32, #tpu.memory_space<vmem>>, vector<8x128xf32>
      tpu.vector_store %arg11[%c0_23, %c0_24], %46 {strides = array<i32>} : memref<8x128xf32, #tpu.memory_space<vmem>>, vector<8x128xf32>,
    } else {
    }
    return
  }
  func.func @transform_0(%arg0: i32, %arg1: i32) -> (i32, i32) {
    %c0_i32 = arith.constant 0 : i32
    %c0_i32_0 = arith.constant 0 : i32
    %c0_i32_1 = arith.constant 0 : i32
    return %c0_i32, %c0_i32_0 : i32, i32
  }
  func.func @transform_1(%arg0: i32, %arg1: i32) -> (i32, i32) {
    %c0_i32 = arith.constant 0 : i32
    %c0_i32_0 = arith.constant 0 : i32
    %c0_i32_1 = arith.constant 0 : i32
    return %c0_i32, %c0_i32_0 : i32, i32
  }
  func.func @transform_2(%arg0: i32, %arg1: i32) -> (i32, i32) {
    %c0_i32 = arith.constant 0 : i32
    %c0_i32_0 = arith.constant 0 : i32
    %c0_i32_1 = arith.constant 0 : i32
    return %c0_i32, %c0_i32_0 : i32, i32
  }
  func.func @transform_3(%arg0: i32, %arg1: i32) -> (i32, i32) {
    %c0_i32 = arith.constant 0 : i32
    %c0_i32_0 = arith.constant 0 : i32
    %c0_i32_1 = arith.constant 0 : i32
    return %c0_i32, %c0_i32_0 : i32, i32
  }
  func.func @transform_4(%arg0: i32, %arg1: i32) -> (i32, i32) {
    %c0_i32 = arith.constant 0 : i32
    %c0_i32_0 = arith.constant 0 : i32
    %c0_i32_1 = arith.constant 0 : i32
    return %c0_i32, %c0_i32_0 : i32, i32
  }
  func.func @transform_5(%arg0: i32, %arg1: i32) -> (i32, i32) {
    %c0_i32 = arith.constant 0 : i32
    %c0_i32_0 = arith.constant 0 : i32
    %c0_i32_1 = arith.constant 0 : i32
    return %c0_i32, %c0_i32_0 : i32, i32
  }
  func.func @transform_6(%arg0: i32, %arg1: i32) -> (i32, i32) {
    %c0_i32 = arith.constant 0 : i32
    %c0_i32_0 = arith.constant 0 : i32
    %c0_i32_1 = arith.constant 0 : i32
    return %c0_i32, %c0_i32_0 : i32, i32
  }
  func.func @transform_7(%arg0: i32, %arg1: i32) -> (i32, i32) {
    %c0_i32 = arith.constant 0 : i32
    %c0_i32_0 = arith.constant 0 : i32
    %c0_i32_1 = arith.constant 0 : i32
    return %c0_i32, %c0_i32_0 : i32, i32
  }
  func.func @transform_8(%arg0: i32, %arg1: i32) -> (i32, i32) {
    %c0_i32 = arith.constant 0 : i32
    %c0_i32_0 = arith.constant 0 : i32
    %c0_i32_1 = arith.constant 0 : i32
    return %c0_i32, %c0_i32_0 : i32, i32
  }
  func.func @transform_9(%arg0: i32, %arg1: i32) -> (i32, i32) {
    %c0_i32 = arith.constant 0 : i32
    %c0_i32_0 = arith.constant 0 : i32
    %c0_i32_1 = arith.constant 0 : i32
    return %c0_i32, %c0_i32_0 : i32, i32
  }
}

</mosaic_0001>

<bundles_post_ra>
// kernel: tpu_custom_call.1
= control target key start
LH: loop header
LB: loop body
LE: loop exit
PB: predicated region body
PF: predicated region fallthrough
CT: control target
= control target key end

     0   :  { %14 = vsyncpa [#allocation5], 0  ;;  %s2777_s0 = inlined_call_operand.vmem [shape: s32[8,1], index: 0, kind: input, shape index: {}]   ;;  %s2778_s1 = inlined_call_operand.vmem [shape: s32[128,1], index: 1, kind: input, shape index: {}]   ;;  %s2779_s2 = inlined_call_operand.vmem [shape: f32[64,32], index: 2, kind: input, shape index: {}]   ;;  %s2780_s3 = inlined_call_operand.vmem [shape: bf16[64,64], index: 3, kind: input, shape index: {}]   ;;  %s2781_s4 = inlined_call_operand.vmem [shape: f32[32,128], index: 4, kind: input, shape index: {}]   ;;  %s2782_s5 = inlined_call_operand.vmem [shape: f32[1,128], index: 5, kind: input, shape index: {}]   ;;  %s2783_s6 = inlined_call_operand.vmem [shape: f32[128,128], index: 6, kind: input, shape index: {}]   ;;  %s2784_s7 = inlined_call_operand.vmem [shape: f32[1,128], index: 7, kind: input, shape index: {}]   ;;  %s2785_s8 = inlined_call_operand.hbm [shape: f32[128,128], index: 8, kind: input, shape index: {}]   ;;  %s2786_s9 = inlined_call_operand.hbm [shape: f32[8,128], index: 9, kind: output, shape index: {}]  }
   0x1   :  { %15 = vsyncpa [#allocation6], 0  ;;  %s2412_s30 = smov 0   ;;  %s2414_s10 = smov 0  }
   0x2   :  { %s2416_s11 = smov 0  }
   0x3 LB: > { %s1643_s12 = sadd.s32 4294967295, %s2353_s11   ;;  %s33_s13 = sadd.s32 1, %s2349_s10  ;;  %s2353_s11 = sphi %s2416_s11, %s21_s11   ;;  %s2349_s10 = sphi %s2414_s10, %s2791_s10   ;;  %s2345_s30 = sphi %s2412_s30, %s2790_s30  }
   0x4   : > { %p35_p0 = scmp.ge.s32.totalorder %s33_s13, 2  ;;  %p1644_p1 = scmp.ge.s32.totalorder %s2353_s11, 1 }
   0x5   : > { %p248_p2 = scmp.lt.s32.totalorder %s2353_s11, 3  ;;  %p2439_p4 = scmp.eq.s32.totalorder %s1643_s12, 0 }
   0x6   : > { %s2793_s13 = smov (%p35_p0, %s33_s13), 0  ;;  %s2355_s16 = smov [#allocation4]  }
   0x7   : > { %p2433_p3 = pnand %p1644_p1, %p248_p2  ;;  %s284_s17 = sshll.u32 %s2355_s16, 4  ;;  %s285_s17 = int_to_ptr.vmem [resolvable:$true] %s284_s17 }
   0x8   : > { %s2284_s18 = scalar_lea.vmem %s285_s17, 2048  ;;  %p2292_p11 = scmp.lt.s32.totalorder %s285_s17, %s285_s17 }
   0x9   : > { %p2212_p5 = pneg %p2433_p3  ;;  %p2285_p8 = scmp.ne.s32.totalorder %s285_s17, %s2284_s18 }
   0xa   : > { %p2293_p12 = scmp.lt.s32.totalorder %s2284_s18, %s2284_s18 }
   0xb   : > { %p2213_p6 = pnand %p2439_p4, %p2212_p5 }
   0xc   : > { %p2294_p13 = por %p2293_p12, %p2292_p11 }
   0xd   : > { %p2275_p7 = pneg %p2213_p6 }
   0xf   : > { %p2287_p9 = pnand %p2285_p8, %p2275_p7 }
  0x11   : > { %p2288_p10 = pneg %p2287_p9 }
  0x13   : > { %p2295_p0 = pnand %p2294_p13, %p2288_p10 }
  0x15   : > { %2298 = shalt.err (!%p2295_p0)
}
  0x16   : > { %s2356_s19 = smov 128   ;;  %s2357_s20 = smov 8  }
  0x17   : > { %2215 = dma.hbm_to_vmem [thread:$0]  (!%p2213_p6), %s2785_s8, 2048, %s285_s17, [#allocation5], %s2356_s19, %s2356_s19, %s2357_s20  }
  0x18   : > { %300 = sbr.rel (%p2433_p3) target bundleno = 1690 (0x69a), region = 56 }
  0x1d   : > { %2336 = dma.done.wait (%p2439_p4), [#allocation5], 2048  }
  0x1e   : > { %2338 = vsyncadd (%p2439_p4), [#allocation5], 4294965248  ;;  %p328_p1 = scmp.eq.s32.totalorder %s2345_s30, 0 }
  0x1f   : > { %v345_v0 = vld [vmem:[%s2781_s4 + $0x18] sm:$0xff] (%p328_p1)  ;;  %v344_v1 = vld [vmem:[%s2781_s4 + $0x10] sm:$0xff] (%p328_p1)  ;;  %v343_v2 = vld [vmem:[%s2781_s4 + $0x8] sm:$0xff] (%p328_p1)  ;;  %vm346_vm0 = vcmask (%p328_p1), 261120  }
  0x20   : > { %333 = sbr.rel (!%p328_p1) target bundleno = 243 (0xf3), region = 64  ;;  %1923 = vmatprep.subr.mxu0 (%p328_p1), %v345_v0  ;;  %2148 = vmatprep.subr.mxu1 (%p328_p1), %v345_v0  ;;  %v342_v3 = vld [vmem:[%s2781_s4] sm:$0xff] (%p328_p1)  ;;  %v335_v6 = vld [vmem:[%s2779_s2 + $0x8] sm:$0xff] (%p328_p1)  ;;  %v336_v8 = vld [vmem:[%s2779_s2 + $0x10] sm:$0xff] (%p328_p1) }
  0x21   : > { %1924 = vmatpush3.msra.mxu0 (%p328_p1), %v345_v0  ;;  %2152 = vmatpush3.msra.mxu1 (%p328_p1), %v345_v0  ;;  %v334_v4 = vld [vmem:[%s2779_s2] sm:$0xff] (%p328_p1)  ;;  %v339_v7 = vld [vmem:[%s2779_s2 + $0x28] sm:$0xff] (%p328_p1)  ;;  %v340_v9 = vld [vmem:[%s2779_s2 + $0x30] sm:$0xff] (%p328_p1) }
  0x22   : > { %1925 = vmatprep.subr.mxu0 (%p328_p1), %v344_v1  ;;  %2149 = vmatprep.subr.mxu1 (%p328_p1), %v344_v1  ;;  %v338_v5 = vld [vmem:[%s2779_s2 + $0x20] sm:$0xff] (%p328_p1)  ;;  %v337_v10 = vld [vmem:[%s2779_s2 + $0x18] sm:$0xff] (%p328_p1) }
  0x23   : > { %1926 = vmatpush3.msra.mxu0 (%p328_p1), %v344_v1  ;;  %2153 = vmatpush3.msra.mxu1 (%p328_p1), %v344_v1  ;;  %v341_v11 = vld [vmem:[%s2779_s2 + $0x38] sm:$0xff] (%p328_p1) }
  0x24   : > { %1927 = vmatprep.subr.mxu0 (%p328_p1), %v343_v2  ;;  %2150 = vmatprep.subr.mxu1 (%p328_p1), %v343_v2 }
  0x25   : > { %1928 = vmatpush3.msra.mxu0 %v343_v2  ;;  %2154 = vmatpush3.msra.mxu1 %v343_v2 }
  0x26   : > { %1929 = vmatprep.subr.mxu0 %v342_v3  ;;  %2151 = vmatprep.subr.mxu1 %v342_v3 }
  0x27   : > { %1930 = vmatpush3.msra.mxu0 %v342_v3  ;;  %2155 = vmatpush3.msra.mxu1 %v342_v3 }
  0x28   : > { %1931 = vmatprep.mubr.msk.f32.mxu0 %vm346_vm0, %v334_v4  ;;  %1937 = vmatprep.mubr.msk.f32.mxu1 %vm346_vm0, %v338_v5 }
  0x29   : > { %1932 = vmatmul.mubr.msk.f32.vlgmr.msra.gmra.mxu0 %vm346_vm0, %v335_v6  ;;  %1938 = vmatmul.mubr.msk.f32.vlgmr.msra.gmra.mxu1 %vm346_vm0, %v339_v7 }
  0x2a   : > { %1934 = vmatprep.mubr.msk.f32.mxu0 %vm346_vm0, %v336_v8  ;;  %1940 = vmatprep.mubr.msk.f32.mxu1 %vm346_vm0, %v340_v9 }
  0x2d   : > { %1935 = vmatmul.mubr.msk.f32.gmra.mxu0 %vm346_vm0, %v337_v10  ;;  %1941 = vmatmul.mubr.msk.f32.gmra.mxu1 %vm346_vm0, %v341_v11 }
  0xe9   : > { %v1933_v12 = vpop.f32.mrf.mxu0  ;;  %v1939_v13 = vpop.f32.mrf.mxu1 }
  0xeb   : > { %v437_v14 = vpop.f32.mrf.mxu0  ;;  %v457_v15 = vpop.f32.mrf.mxu1 }
  0xec   : > { %v1761_v16 = vpack.c.bf16 %v1933_v12, %v437_v14  ;;  %v1771_v17 = vpack.c.bf16 %v1939_v13, %v457_v15 }
  0xed   : > { %v1936_v18 = vpop.f32.mrf.mxu0  ;;  %v1942_v19 = vpop.f32.mrf.mxu1 }
  0xee   : > { %1762 = vst [vmem:[#allocation2] sm:$0xff] %v1761_v16   ;;  %1799 = vst [vmem:[#allocation2 + $0x10] sm:$0xff] %v1771_v17  }
  0xef   : > { %v447_v20 = vpop.f32.mrf.mxu0  ;;  %v467_v21 = vpop.f32.mrf.mxu1 }
  0xf0   : > { %v1766_v22 = vpack.c.bf16 %v1936_v18, %v447_v20  ;;  %v1776_v23 = vpack.c.bf16 %v1942_v19, %v467_v21 }
  0xf2   : > { %1798 = vst [vmem:[#allocation2 + $0x8] sm:$0xff] %v1766_v22   ;;  %1800 = vst [vmem:[#allocation2 + $0x18] sm:$0xff] %v1776_v23  }
  0xf3 PF: > { %p1665_p2 = scmp.ne.s32.totalorder %s2345_s30, 0 }
  0xf5   : > { %518 = sbr.rel (%p1665_p2) target bundleno = 471 (0x1d7), region = 68 }
  0xfa   : > { %v2251_v24 = vld [vmem:[#allocation2 + $0x18] sm:$0xff]   ;;  %v2252_v25 = vld [vmem:[#allocation2 + $0x10] sm:$0xff]   ;;  %v2253_v26 = vld [vmem:[#allocation2 + $0x8] sm:$0xff]   ;;  %vm590_vm1 = vcmask 523264  }
  0xfb   : > { %1943 = vmatprep.subr.bf16.mxu0 %v2251_v24  ;;  %2156 = vmatprep.subr.bf16.mxu1 %v2251_v24  ;;  %v2255_v27 = vld [vmem:[%s2780_s3] sm:$0xff]   ;;  %v2256_v28 = vld [vmem:[%s2780_s3 + $0x10] sm:$0xff]   ;;  %v2257_v30 = vld [vmem:[%s2780_s3 + $0x8] sm:$0xff]  }
  0xfc   : > { %1944 = vmatpush3.bf16.msra.mxu0 %v2251_v24  ;;  %2160 = vmatpush3.bf16.msra.mxu1 %v2251_v24  ;;  %v2254_v29 = vld [vmem:[#allocation2] sm:$0xff]   ;;  %v2258_v31 = vld [vmem:[%s2780_s3 + $0x18] sm:$0xff]  }
  0xfd   : > { %1945 = vmatprep.subr.bf16.mxu0 %v2252_v25  ;;  %2157 = vmatprep.subr.bf16.mxu1 %v2252_v25  ;;  %v1666_v32 = vld [vmem:[%s2782_s5] ss:$0 sm:$0xff] }
  0xfe   : > { %1951 = vmatprep.mubr.msk.bf16.mxu0 %vm590_vm1, %v2255_v27  ;;  %1955 = vmatprep.mubr.msk.bf16.mxu1 %vm590_vm1, %v2256_v28 }
 0x100   : > { %1946 = vmatpush3.bf16.msra.mxu0 %v2252_v25  ;;  %2161 = vmatpush3.bf16.msra.mxu1 %v2252_v25 }
 0x101   : > { %1947 = vmatprep.subr.bf16.mxu0 %v2253_v26  ;;  %2158 = vmatprep.subr.bf16.mxu1 %v2253_v26 }
 0x104   : > { %1948 = vmatpush3.bf16.msra.mxu0 %v2253_v26  ;;  %2162 = vmatpush3.bf16.msra.mxu1 %v2253_v26 }
 0x105   : > { %1949 = vmatprep.subr.bf16.mxu0 %v2254_v29  ;;  %2159 = vmatprep.subr.bf16.mxu1 %v2254_v29 }
 0x108   : > { %1950 = vmatpush3.bf16.msra.mxu0 %v2254_v29  ;;  %2163 = vmatpush3.bf16.msra.mxu1 %v2254_v29 }
 0x10b   : > { %1952 = vmatmul.mubr.msk.bf16.vlgmr.msra.gmra.mxu0 %vm590_vm1, %v2257_v30  ;;  %1956 = vmatmul.mubr.msk.bf16.vlgmr.msra.gmra.mxu1 %vm590_vm1, %v2258_v31 }
 0x1cb   : > { %v1953_v33 = vpop.f32.mrf.mxu0  ;;  %v1957_v34 = vpop.f32.mrf.mxu1 }
 0x1cc   : > { %v646_v35 = vadd.f32 %v1953_v33, %v1666_v32  ;;  %v662_v36 = vadd.f32 %v1957_v34, %v1666_v32 }
 0x1cd   : > { %v637_v37 = vpop.f32.mrf.mxu0  ;;  %v653_v38 = vpop.f32.mrf.mxu1 }
 0x1ce   : > { %v670_v39 = vmax.f32 %v646_v35, 0.0  ;;  %v674_v40 = vmax.f32 %v662_v36, 0.0  ;;  %v638_v41 = vadd.f32 %v1666_v32, %v637_v37  ;;  %v654_v42 = vadd.f32 %v1666_v32, %v653_v38 }
 0x1cf   : > { %v1954_v43 = vpop.f32.mrf.mxu0  ;;  %v1958_v44 = vpop.f32.mrf.mxu1 }
 0x1d0   : > { %679 = vst [vmem:[#allocation3 + $0x18] sm:$0xff] %v670_v39  ;;  %683 = vst [vmem:[#allocation3 + $0x28] sm:$0xff] %v674_v40  ;;  %v668_v45 = vmax.f32 %v638_v41, 0.0  ;;  %v672_v46 = vmax.f32 %v654_v42, 0.0  ;;  %v649_v47 = vadd.f32 %v1954_v43, %v1666_v32  ;;  %v665_v48 = vadd.f32 %v1958_v44, %v1666_v32 }
 0x1d1   : > { %v640_v49 = vpop.f32.mrf.mxu0  ;;  %v656_v50 = vpop.f32.mrf.mxu1 }
 0x1d2   : > { %677 = vst [vmem:[#allocation3 + $0x30] sm:$0xff] %v668_v45  ;;  %681 = vst [vmem:[#allocation3 + $0x8] sm:$0xff] %v672_v46  ;;  %v671_v51 = vmax.f32 %v649_v47, 0.0  ;;  %v675_v52 = vmax.f32 %v665_v48, 0.0  ;;  %v641_v53 = vadd.f32 %v1666_v32, %v640_v49  ;;  %v657_v54 = vadd.f32 %v1666_v32, %v656_v50 }
 0x1d4   : > { %680 = vst [vmem:[#allocation3 + $0x10] sm:$0xff] %v671_v51  ;;  %684 = vst [vmem:[#allocation3 + $0x38] sm:$0xff] %v675_v52  ;;  %v669_v55 = vmax.f32 %v641_v53, 0.0  ;;  %v673_v56 = vmax.f32 %v657_v54, 0.0 }
 0x1d6   : > { %678 = vst [vmem:[#allocation3] sm:$0xff] %v669_v55  ;;  %682 = vst [vmem:[#allocation3 + $0x20] sm:$0xff] %v673_v56 }
 0x1d7 PF: > { %686 = sbr.rel (!%p328_p1) target bundleno = 707 (0x2c3), region = 72  ;;  %v710_v57 = vld [vmem:[%s2783_s6 + $0x78] sm:$0xff] (%p328_p1)  ;;  %v709_v58 = vld [vmem:[%s2783_s6 + $0x70] sm:$0xff] (%p328_p1)  ;;  %v708_v59 = vld [vmem:[%s2783_s6 + $0x68] sm:$0xff] (%p328_p1) }
 0x1d8   : > { %1959 = vmatprep.subr.mxu0 (%p328_p1), %v710_v57  ;;  %2164 = vmatprep.subr.mxu1 (%p328_p1), %v710_v57  ;;  %v707_v60 = vld [vmem:[%s2783_s6 + $0x60] sm:$0xff] (%p328_p1)  ;;  %v706_v61 = vld [vmem:[%s2783_s6 + $0x58] sm:$0xff] (%p328_p1)  ;;  %v705_v62 = vld [vmem:[%s2783_s6 + $0x50] sm:$0xff] (%p328_p1) }
 0x1d9   : > { %1960 = vmatpush3.msra.mxu0 (%p328_p1), %v710_v57  ;;  %2180 = vmatpush3.msra.mxu1 (%p328_p1), %v710_v57  ;;  %v704_v63 = vld [vmem:[%s2783_s6 + $0x48] sm:$0xff] (%p328_p1)  ;;  %v703_v0 = vld [vmem:[%s2783_s6 + $0x40] sm:$0xff] (%p328_p1)  ;;  %v702_v1 = vld [vmem:[%s2783_s6 + $0x38] sm:$0xff] (%p328_p1) }
 0x1da   : > { %1961 = vmatprep.subr.mxu0 (%p328_p1), %v709_v58  ;;  %2165 = vmatprep.subr.mxu1 (%p328_p1), %v709_v58  ;;  %v701_v2 = vld [vmem:[%s2783_s6 + $0x30] sm:$0xff] (%p328_p1)  ;;  %v700_v3 = vld [vmem:[%s2783_s6 + $0x28] sm:$0xff] (%p328_p1)  ;;  %v699_v4 = vld [vmem:[%s2783_s6 + $0x20] sm:$0xff] (%p328_p1) }
 0x1db   : > { %1962 = vmatpush3.msra.mxu0 (%p328_p1), %v709_v58  ;;  %2181 = vmatpush3.msra.mxu1 (%p328_p1), %v709_v58  ;;  %v698_v5 = vld [vmem:[%s2783_s6 + $0x18] sm:$0xff] (%p328_p1)  ;;  %v697_v6 = vld [vmem:[%s2783_s6 + $0x10] sm:$0xff] (%p328_p1)  ;;  %v696_v7 = vld [vmem:[%s2783_s6 + $0x8] sm:$0xff] (%p328_p1) }
 0x1dc   : > { %1963 = vmatprep.subr.mxu0 %v708_v59  ;;  %2166 = vmatprep.subr.mxu1 %v708_v59  ;;  %v695_v8 = vld [vmem:[%s2783_s6] sm:$0xff]  ;;  %v687_v9 = vld [vmem:[#allocation3 + $0x30] sm:$0xff]  ;;  %v691_v10 = vld [vmem:[#allocation3 + $0x8] sm:$0xff] }
 0x1dd   : > { %1964 = vmatpush3.msra.mxu0 %v708_v59  ;;  %2182 = vmatpush3.msra.mxu1 %v708_v59  ;;  %v688_v11 = vld [vmem:[#allocation3] sm:$0xff]  ;;  %v689_v13 = vld [vmem:[#allocation3 + $0x18] sm:$0xff]  ;;  %v693_v14 = vld [vmem:[#allocation3 + $0x28] sm:$0xff] }
 0x1de   : > { %1965 = vmatprep.subr.mxu0 %v707_v60  ;;  %2167 = vmatprep.subr.mxu1 %v707_v60  ;;  %v692_v12 = vld [vmem:[#allocation3 + $0x20] sm:$0xff]  ;;  %v690_v15 = vld [vmem:[#allocation3 + $0x10] sm:$0xff]  ;;  %v694_v16 = vld [vmem:[#allocation3 + $0x38] sm:$0xff] }
 0x1df   : > { %1966 = vmatpush3.msra.mxu0 %v707_v60  ;;  %2183 = vmatpush3.msra.mxu1 %v707_v60 }
 0x1e0   : > { %1967 = vmatprep.subr.mxu0 %v706_v61  ;;  %2168 = vmatprep.subr.mxu1 %v706_v61 }
 0x1e1   : > { %1968 = vmatpush3.msra.mxu0 %v706_v61  ;;  %2184 = vmatpush3.msra.mxu1 %v706_v61 }
 0x1e2   : > { %1969 = vmatprep.subr.mxu0 %v705_v62  ;;  %2169 = vmatprep.subr.mxu1 %v705_v62 }
 0x1e3   : > { %1970 = vmatpush3.msra.mxu0 %v705_v62  ;;  %2185 = vmatpush3.msra.mxu1 %v705_v62 }
 0x1e4   : > { %1971 = vmatprep.subr.mxu0 %v704_v63  ;;  %2170 = vmatprep.subr.mxu1 %v704_v63 }
 0x1e5   : > { %1972 = vmatpush3.msra.mxu0 %v704_v63  ;;  %2186 = vmatpush3.msra.mxu1 %v704_v63 }
 0x1e6   : > { %1973 = vmatprep.subr.mxu0 %v703_v0  ;;  %2171 = vmatprep.subr.mxu1 %v703_v0 }
 0x1e7   : > { %1974 = vmatpush3.msra.mxu0 %v703_v0  ;;  %2187 = vmatpush3.msra.mxu1 %v703_v0 }
 0x1e8   : > { %1975 = vmatprep.subr.mxu0 %v702_v1  ;;  %2172 = vmatprep.subr.mxu1 %v702_v1 }
 0x1e9   : > { %1976 = vmatpush3.msra.mxu0 %v702_v1  ;;  %2188 = vmatpush3.msra.mxu1 %v702_v1 }
 0x1ea   : > { %1977 = vmatprep.subr.mxu0 %v701_v2  ;;  %2173 = vmatprep.subr.mxu1 %v701_v2 }
 0x1eb   : > { %1978 = vmatpush3.msra.mxu0 %v701_v2  ;;  %2189 = vmatpush3.msra.mxu1 %v701_v2 }
 0x1ec   : > { %1979 = vmatprep.subr.mxu0 %v700_v3  ;;  %2174 = vmatprep.subr.mxu1 %v700_v3 }
 0x1ed   : > { %1980 = vmatpush3.msra.mxu0 %v700_v3  ;;  %2190 = vmatpush3.msra.mxu1 %v700_v3 }
 0x1ee   : > { %1981 = vmatprep.subr.mxu0 %v699_v4  ;;  %2175 = vmatprep.subr.mxu1 %v699_v4 }
 0x1ef   : > { %1982 = vmatpush3.msra.mxu0 %v699_v4  ;;  %2191 = vmatpush3.msra.mxu1 %v699_v4 }
 0x1f0   : > { %1983 = vmatprep.subr.mxu0 %v698_v5  ;;  %2176 = vmatprep.subr.mxu1 %v698_v5 }
 0x1f1   : > { %1984 = vmatpush3.msra.mxu0 %v698_v5  ;;  %2192 = vmatpush3.msra.mxu1 %v698_v5 }
 0x1f2   : > { %1985 = vmatprep.subr.mxu0 %v697_v6  ;;  %2177 = vmatprep.subr.mxu1 %v697_v6 }
 0x1f3   : > { %1986 = vmatpush3.msra.mxu0 %v697_v6  ;;  %2193 = vmatpush3.msra.mxu1 %v697_v6 }
 0x1f4   : > { %1987 = vmatprep.subr.mxu0 %v696_v7  ;;  %2178 = vmatprep.subr.mxu1 %v696_v7 }
 0x1f5   : > { %1988 = vmatpush3.msra.mxu0 %v696_v7  ;;  %2194 = vmatpush3.msra.mxu1 %v696_v7 }
 0x1f6   : > { %1989 = vmatprep.subr.mxu0 %v695_v8  ;;  %2179 = vmatprep.subr.mxu1 %v695_v8 }
 0x1f7   : > { %1990 = vmatpush3.msra.mxu0 %v695_v8  ;;  %2195 = vmatpush3.msra.mxu1 %v695_v8 }
 0x1f8   : > { %1991 = vmatprep.mubr.f32.mxu0 %v687_v9  ;;  %1997 = vmatprep.mubr.f32.mxu1 %v691_v10 }
 0x1f9   : > { %1992 = vmatmul.mubr.f32.vlgmr.msra.gmra.mxu0 %v688_v11  ;;  %1998 = vmatmul.mubr.f32.vlgmr.msra.gmra.mxu1 %v692_v12 }
 0x1fa   : > { %1994 = vmatprep.mubr.f32.mxu0 %v689_v13  ;;  %2000 = vmatprep.mubr.f32.mxu1 %v693_v14 }
 0x1fd   : > { %1995 = vmatmul.mubr.f32.gmra.mxu0 %v690_v15  ;;  %2001 = vmatmul.mubr.f32.gmra.mxu1 %v694_v16 }
 0x2b9   : > { %v1993_v17 = vpop.f32.mrf.mxu0  ;;  %v1999_v18 = vpop.f32.mrf.mxu1 }
 0x2bb   : > { %v777_v19 = vpop.f32.mrf.mxu0  ;;  %v797_v20 = vpop.f32.mrf.mxu1 }
 0x2bc   : > { %v1781_v21 = vpack.c.bf16 %v1993_v17, %v777_v19  ;;  %v1791_v22 = vpack.c.bf16 %v1999_v18, %v797_v20 }
 0x2bd   : > { %v1996_v23 = vpop.f32.mrf.mxu0  ;;  %v2002_v24 = vpop.f32.mrf.mxu1 }
 0x2be   : > { %1782 = vst [vmem:[#allocation2] sm:$0xff] %v1781_v21   ;;  %1802 = vst [vmem:[#allocation2 + $0x10] sm:$0xff] %v1791_v22  }
 0x2bf   : > { %v787_v25 = vpop.f32.mrf.mxu0  ;;  %v807_v26 = vpop.f32.mrf.mxu1 }
 0x2c0   : > { %v1786_v27 = vpack.c.bf16 %v1996_v23, %v787_v25  ;;  %v1796_v28 = vpack.c.bf16 %v2002_v24, %v807_v26 }
 0x2c2   : > { %1801 = vst [vmem:[#allocation2 + $0x8] sm:$0xff] %v1786_v27   ;;  %1803 = vst [vmem:[#allocation2 + $0x18] sm:$0xff] %v1796_v28  }
 0x2c3 PF: > { %p856_p3 = scmp.eq.s32.totalorder %s2345_s30, 1  ;;  %p1687_p4 = scmp.ne.s32.totalorder %s2345_s30, 1 }
 0x2c5   : > { %859 = sbr.rel (%p1687_p4) target bundleno = 933 (0x3a5), region = 76 }
 0x2ca   : > { %v2259_v29 = vld [vmem:[#allocation2 + $0x18] sm:$0xff]   ;;  %v2260_v30 = vld [vmem:[#allocation2 + $0x10] sm:$0xff]   ;;  %v2261_v31 = vld [vmem:[#allocation2 + $0x8] sm:$0xff]   ;;  %vm931_vm2 = vcmask 523264  }
 0x2cb   : > { %2003 = vmatprep.subr.bf16.mxu0 %v2259_v29  ;;  %2196 = vmatprep.subr.bf16.mxu1 %v2259_v29  ;;  %v2263_v32 = vld [vmem:[%s2780_s3] sm:$0xff]   ;;  %v2264_v33 = vld [vmem:[%s2780_s3 + $0x10] sm:$0xff]   ;;  %v2265_v35 = vld [vmem:[%s2780_s3 + $0x8] sm:$0xff]  }
 0x2cc   : > { %2004 = vmatpush3.bf16.msra.mxu0 %v2259_v29  ;;  %2200 = vmatpush3.bf16.msra.mxu1 %v2259_v29  ;;  %v2262_v34 = vld [vmem:[#allocation2] sm:$0xff]   ;;  %v2266_v36 = vld [vmem:[%s2780_s3 + $0x18] sm:$0xff]  }
 0x2cd   : > { %2005 = vmatprep.subr.bf16.mxu0 %v2260_v30  ;;  %2197 = vmatprep.subr.bf16.mxu1 %v2260_v30  ;;  %v1688_v37 = vld [vmem:[%s2784_s7] ss:$0 sm:$0xff] }
 0x2ce   : > { %2011 = vmatprep.mubr.msk.bf16.mxu0 %vm931_vm2, %v2263_v32  ;;  %2015 = vmatprep.mubr.msk.bf16.mxu1 %vm931_vm2, %v2264_v33 }
 0x2d0   : > { %2006 = vmatpush3.bf16.msra.mxu0 %v2260_v30  ;;  %2201 = vmatpush3.bf16.msra.mxu1 %v2260_v30 }
 0x2d1   : > { %2007 = vmatprep.subr.bf16.mxu0 %v2261_v31  ;;  %2198 = vmatprep.subr.bf16.mxu1 %v2261_v31 }
 0x2d4   : > { %2008 = vmatpush3.bf16.msra.mxu0 %v2261_v31  ;;  %2202 = vmatpush3.bf16.msra.mxu1 %v2261_v31 }
 0x2d5   : > { %2009 = vmatprep.subr.bf16.mxu0 %v2262_v34  ;;  %2199 = vmatprep.subr.bf16.mxu1 %v2262_v34 }
 0x2d8   : > { %2010 = vmatpush3.bf16.msra.mxu0 %v2262_v34  ;;  %2203 = vmatpush3.bf16.msra.mxu1 %v2262_v34 }
 0x2db   : > { %2012 = vmatmul.mubr.msk.bf16.vlgmr.msra.gmra.mxu0 %vm931_vm2, %v2265_v35  ;;  %2016 = vmatmul.mubr.msk.bf16.vlgmr.msra.gmra.mxu1 %vm931_vm2, %v2266_v36 }
 0x39b   : > { %v2013_v38 = vpop.f32.mrf.mxu0  ;;  %v2017_v39 = vpop.f32.mrf.mxu1 }
 0x39c   : > { %v987_v40 = vadd.f32 %v2013_v38, %v1688_v37  ;;  %v1003_v41 = vadd.f32 %v2017_v39, %v1688_v37 }
 0x39d   : > { %v978_v42 = vpop.f32.mrf.mxu0  ;;  %v994_v43 = vpop.f32.mrf.mxu1 }
 0x39e   : > { %1012 = vst [vmem:[#allocation3 + $0x18] sm:$0xff] %v987_v40  ;;  %1016 = vst [vmem:[#allocation3 + $0x28] sm:$0xff] %v1003_v41  ;;  %v979_v44 = vadd.f32 %v1688_v37, %v978_v42  ;;  %v995_v45 = vadd.f32 %v1688_v37, %v994_v43 }
 0x39f   : > { %v2014_v46 = vpop.f32.mrf.mxu0  ;;  %v2018_v47 = vpop.f32.mrf.mxu1 }
 0x3a0   : > { %1010 = vst [vmem:[#allocation3 + $0x30] sm:$0xff] %v979_v44  ;;  %1014 = vst [vmem:[#allocation3 + $0x8] sm:$0xff] %v995_v45  ;;  %v990_v48 = vadd.f32 %v2014_v46, %v1688_v37  ;;  %v1006_v49 = vadd.f32 %v2018_v47, %v1688_v37 }
 0x3a1   : > { %v981_v50 = vpop.f32.mrf.mxu0  ;;  %v997_v51 = vpop.f32.mrf.mxu1 }
 0x3a2   : > { %1013 = vst [vmem:[#allocation3 + $0x10] sm:$0xff] %v990_v48  ;;  %1017 = vst [vmem:[#allocation3 + $0x38] sm:$0xff] %v1006_v49  ;;  %v982_v52 = vadd.f32 %v1688_v37, %v981_v50  ;;  %v998_v53 = vadd.f32 %v1688_v37, %v997_v51 }
 0x3a4   : > { %1011 = vst [vmem:[#allocation3] sm:$0xff] %v982_v52  ;;  %1015 = vst [vmem:[#allocation3 + $0x20] sm:$0xff] %v998_v53 }
 0x3a5 PF: > { %1021 = sbr.rel (!%p856_p3) target bundleno = 1675 (0x68b), region = 80  ;;  %v1032_v54 = vld [vmem:[%s2777_s0] sm:$0xff] (%p856_p3)  ;;  %v2358_v55 = vmov (%p856_p3), 0   ;;  %v1114_v56 = vld [vmem:[%s2778_s1 + $0x8] sm:$0xff] (%p856_p3)  ;;  %v1115_v58 = vld [vmem:[%s2778_s1 + $0x10] sm:$0xff] (%p856_p3)  ;;  %v2359_v59 = vmov (%p856_p3), 0.0   ;;  %v1030_v17 = vlaneseq (%p856_p3) }
 0x3a6   : > { %2267 = vset.pattern.permute.xlu0 (%p856_p3), %v2358_v55  ;;  %2268 = vset.pattern.permute.xlu1 (%p856_p3), %v2358_v55  ;;  %v1113_v57 = vld [vmem:[%s2778_s1] sm:$0xff] (%p856_p3)  ;;  %vm2360_vm3 = vmmov (%p856_p3), 0   ;;  %v2614_v61 = vld [vmem:[#allocation3 + $0x28] sm:$0xff] (%p856_p3)  ;;  %v1116_v62 = vld [vmem:[%s2778_s1 + $0x18] sm:$0xff] (%p856_p3)  ;;  %vm1039_vm4 = vcmask (%p856_p3), 523264  }
 0x3a7   : > { %1034 = vperm.xlu0 (%p856_p3), %2267, %v1032_v54   ;;  %1133 = vperm.xlu1 (%p856_p3), %2268, %v1114_v56   ;;  %v1117_v63 = vld [vmem:[%s2778_s1 + $0x20] sm:$0xff] (%p856_p3)  ;;  %v1118_v1 = vld [vmem:[%s2778_s1 + $0x28] sm:$0xff] (%p856_p3)  ;;  %v1119_v2 = vld [vmem:[%s2778_s1 + $0x30] sm:$0xff] (%p856_p3)  ;;  %v2663_v18 = vand.u32 (%p856_p3), 127, %v1030_v17 }
 0x3a8   : > { %2019 = vmatprep.subr.mxu0 (%p856_p3), %v2359_v59  ;;  %2035 = vmatprep.mubr.msk.f32.mxu0 (%p856_p3), %vm2360_vm3, %v2359_v59  ;;  %v1026_v3 = vld [vmem:[#allocation3 + $0x8] sm:$0xff] (%p856_p3)  ;;  %v1120_v5 = vld [vmem:[%s2778_s1 + $0x38] sm:$0xff] (%p856_p3)  ;;  %v1121_v6 = vld [vmem:[%s2778_s1 + $0x40] sm:$0xff] (%p856_p3) }
 0x3a9   : > { %2113 = vmatprep.subr.mxu1 (%p856_p3), %v2359_v59  ;;  %2145 = vmatprep.mubr.msk.f32.mxu1 (%p856_p3), %vm2360_vm3, %v2359_v59  ;;  %v1029_v60 = vld [vmem:[#allocation3 + $0x38] sm:$0xff] (%p856_p3)  ;;  %v1025_v4 = vld [vmem:[#allocation3 + $0x10] sm:$0xff] (%p856_p3)  ;;  %v1122_v8 = vld [vmem:[%s2778_s1 + $0x48] sm:$0xff] (%p856_p3) }
 0x3aa   : > { %2020 = vmatpush3.msra.mxu0 %v1029_v60  ;;  %v1024_v7 = vld [vmem:[#allocation3 + $0x18] sm:$0xff]  ;;  %v1123_v9 = vld [vmem:[%s2778_s1 + $0x50] sm:$0xff]  ;;  %v1125_v13 = vld [vmem:[%s2778_s1 + $0x60] sm:$0xff] }
 0x3ab   : > { %1130 = vperm.xlu0 %2267, %v1113_v57   ;;  %1136 = vperm.xlu1 %2268, %v1115_v58   ;;  %v1027_v0 = vld [vmem:[#allocation3 + $0x20] sm:$0xff]  ;;  %v1022_v11 = vld [vmem:[#allocation3 + $0x30] sm:$0xff]  ;;  %v1124_v12 = vld [vmem:[%s2778_s1 + $0x58] sm:$0xff] }
 0x3ac   : > { %2021 = vmatprep.subr.mxu0 %v2359_v59  ;;  %v1023_v10 = vld [vmem:[#allocation3] sm:$0xff]  ;;  %v1126_v14 = vld [vmem:[%s2778_s1 + $0x68] sm:$0xff]  ;;  %v1127_v15 = vld [vmem:[%s2778_s1 + $0x70] sm:$0xff] }
 0x3ad   : > { %2022 = vmatpush3.msra.mxu0 %v2614_v61  ;;  %v1128_v16 = vld [vmem:[%s2778_s1 + $0x78] sm:$0xff]  ;;  %v1432_v34 = vld [vmem:[#allocation4 + $0x70] sm:$0xff]  ;;  %v1431_v36 = vld [vmem:[#allocation4 + $0x68] sm:$0xff] }
 0x3ae   : > { %2023 = vmatprep.subr.mxu0 %v2359_v59  ;;  %v1433_v33 = vld [vmem:[#allocation4 + $0x78] sm:$0xff]  ;;  %v1430_v40 = vld [vmem:[#allocation4 + $0x60] sm:$0xff]  ;;  %v1428_v44 = vld [vmem:[#allocation4 + $0x50] sm:$0xff] }
 0x3af   : > { %1139 = vperm.xlu0 %2267, %v1116_v62   ;;  %1142 = vperm.xlu1 %2268, %v1117_v63   ;;  %v1429_v42 = vld [vmem:[#allocation4 + $0x58] sm:$0xff]  ;;  %v1427_v48 = vld [vmem:[#allocation4 + $0x48] sm:$0xff]  ;;  %v1426_v50 = vld [vmem:[#allocation4 + $0x40] sm:$0xff] }
 0x3b0   : > { %2024 = vmatpush3.msra.mxu0 %v1027_v0  ;;  %v1425_v52 = vld [vmem:[#allocation4 + $0x38] sm:$0xff]  ;;  %v1424_v56 = vld [vmem:[#allocation4 + $0x30] sm:$0xff]  ;;  %v1423_v58 = vld [vmem:[#allocation4 + $0x28] sm:$0xff] }
 0x3b1   : > { %2025 = vmatprep.subr.mxu0 %v2359_v59 }
 0x3b2   : > { %2026 = vmatpush3.msra.mxu0 %v1026_v3 }
 0x3b3   : > { %1145 = vperm.xlu0 %2267, %v1118_v1   ;;  %1148 = vperm.xlu1 %2268, %v1119_v2   ;;  %v1420_v2 = vld [vmem:[#allocation4 + $0x10] sm:$0xff] }
 0x3b4   : > { %2027 = vmatprep.subr.mxu0 %v2359_v59 }
 0x3b5   : > { %2028 = vmatpush3.msra.mxu0 %v1025_v4 }
 0x3b6   : > { %2029 = vmatprep.subr.mxu0 %v2359_v59 }
 0x3b7   : > { %1151 = vperm.xlu0 %2267, %v1120_v5   ;;  %1154 = vperm.xlu1 %2268, %v1121_v6   ;;  %v1418_v5 = vld [vmem:[#allocation4] sm:$0xff] }
 0x3b8   : > { %2030 = vmatpush3.msra.mxu0 %v1024_v7 }
 0x3b9   : > { %2031 = vmatprep.subr.mxu0 %v2359_v59 }
 0x3ba   : > { %2032 = vmatpush3.msra.mxu0 %v1023_v10 }
 0x3bb   : > { %1157 = vperm.xlu0 %2267, %v1122_v8   ;;  %1160 = vperm.xlu1 %2268, %v1123_v9  }
 0x3bc   : > { %2033 = vmatprep.subr.mxu0 %v2359_v59 }
 0x3bd   : > { %2034 = vmatpush3.msra.mxu0 %v1022_v11 }
 0x3be   : > { %2038 = vmatprep.subr.mxu0 %v1029_v60 }
 0x3bf   : > { %1163 = vperm.xlu0 %2267, %v1124_v12   ;;  %1166 = vperm.xlu1 %2268, %v1125_v13  }
 0x3c3   : > { %1169 = vperm.xlu0 %2267, %v1126_v14   ;;  %1172 = vperm.xlu1 %2268, %v1127_v15  }
 0x3c7   : > { %1175 = vperm.xlu0 %2267, %v1128_v16  }
 0x422   : > { %v1035_v19 = vpop.permute.xlu0 %1034  ;;  %v1134_v20 = vpop.permute.xlu1 %1133 }
 0x423   : > { %vm1036_vm5 = vcmp.eq.s32.totalorder %v2663_v18, %v1035_v19  ;;  %vm1178_vm7 = vcmp.eq.s32.totalorder %v2663_v18, %v1134_v20 }
 0x424   : > { %v1702_v21 = vsel %vm1036_vm5, 1.0, %v2359_v59  ;;  %v1705_v29 = vsel %vm1178_vm7, 1.0, %v2359_v59 }
 0x425   : > { %2036 = vmatmul.mubr.msk.f32.vlgmr.msra.gmra.mxu0 %vm1039_vm4, %v1702_v21 }
 0x426   : > { %2039 = vmatpush3.msra.mxu0 %v1029_v60  ;;  %v1131_v22 = vpop.permute.xlu0 %1130  ;;  %v1137_v23 = vpop.permute.xlu1 %1136 }
 0x427   : > { %vm1177_vm6 = vcmp.eq.s32.totalorder %v2663_v18, %v1131_v22  ;;  %2040 = vmatprep.subr.mxu0 %v2614_v61  ;;  %vm1179_vm8 = vcmp.eq.s32.totalorder %v2663_v18, %v1137_v23 }
 0x428   : > { %v1704_v24 = vsel %vm1177_vm6, 1.0, %v2359_v59  ;;  %2041 = vmatpush3.msra.mxu0 %v2614_v61  ;;  %v1706_v31 = vsel %vm1179_vm8, 1.0, %v2359_v59  ;;  %v1422_v61 = vld [vmem:[#allocation4 + $0x20] sm:$0xff] }
 0x429   : > { %2042 = vmatprep.subr.mxu0 %v1027_v0  ;;  %2054 = vmatprep.mubr.msk.f32.mxu0 %vm1039_vm4, %v1704_v24 }
 0x42a   : > { %2043 = vmatpush3.msra.mxu0 %v1027_v0  ;;  %v1140_v25 = vpop.permute.xlu0 %1139  ;;  %v1143_v26 = vpop.permute.xlu1 %1142  ;;  %v1421_v0 = vld [vmem:[#allocation4 + $0x18] sm:$0xff] }
 0x42b   : > { %2044 = vmatprep.subr.mxu0 %v1026_v3  ;;  %vm1181_vm9 = vcmp.eq.s32.totalorder %v2663_v18, %v1143_v26  ;;  %vm1180_vm10 = vcmp.eq.s32.totalorder %v2663_v18, %v1140_v25 }
 0x42c   : > { %2045 = vmatpush3.msra.mxu0 %v1026_v3  ;;  %v1708_v35 = vsel %vm1181_vm9, 1.0, %v2359_v59  ;;  %v1707_v37 = vsel %vm1180_vm10, 1.0, %v2359_v59  ;;  %v1419_v3 = vld [vmem:[#allocation4 + $0x8] sm:$0xff] }
 0x42d   : > { %2046 = vmatprep.subr.mxu0 %v1025_v4 }
 0x42e   : > { %2047 = vmatpush3.msra.mxu0 %v1025_v4  ;;  %v1146_v27 = vpop.permute.xlu0 %1145  ;;  %v1149_v28 = vpop.permute.xlu1 %1148 }
 0x42f   : > { %2048 = vmatprep.subr.mxu0 %v1024_v7  ;;  %vm1183_vm11 = vcmp.eq.s32.totalorder %v2663_v18, %v1149_v28  ;;  %vm1182_vm12 = vcmp.eq.s32.totalorder %v2663_v18, %v1146_v27 }
 0x430   : > { %2049 = vmatpush3.msra.mxu0 %v1024_v7  ;;  %v1710_v41 = vsel %vm1183_vm11, 1.0, %v2359_v59  ;;  %v1709_v43 = vsel %vm1182_vm12, 1.0, %v2359_v59 }
 0x431   : > { %2050 = vmatprep.subr.mxu0 %v1023_v10 }
 0x432   : > { %2051 = vmatpush3.msra.mxu0 %v1023_v10  ;;  %v1152_v30 = vpop.permute.xlu0 %1151  ;;  %v1155_v32 = vpop.permute.xlu1 %1154 }
 0x433   : > { %2052 = vmatprep.subr.mxu0 %v1022_v11  ;;  %vm1185_vm13 = vcmp.eq.s32.totalorder %v2663_v18, %v1155_v32  ;;  %vm1184_vm14 = vcmp.eq.s32.totalorder %v2663_v18, %v1152_v30 }
 0x434   : > { %2053 = vmatpush3.msra.mxu0 %v1022_v11  ;;  %v1712_v46 = vsel %vm1185_vm13, 1.0, %v2359_v59  ;;  %v1711_v49 = vsel %vm1184_vm14, 1.0, %v2359_v59 }
 0x435   : > { %2055 = vmatmul.mubr.msk.f32.vlgmr.msra.gmra.mxu0 %vm1039_vm4, %v1705_v29  ;;  %2078 = vmatprep.subr.mxu0 %v2359_v59 }
 0x436   : > { %2057 = vmatprep.mubr.msk.f32.mxu0 %vm1039_vm4, %v1706_v31  ;;  %2079 = vmatpush3.msra.mxu0 %v1433_v33  ;;  %v1158_v38 = vpop.permute.xlu0 %1157  ;;  %v1161_v39 = vpop.permute.xlu1 %1160 }
 0x437   : > { %2080 = vmatprep.subr.mxu0 %v2359_v59  ;;  %vm1187_vm15 = vcmp.eq.s32.totalorder %v2663_v18, %v1161_v39  ;;  %vm1186_vm0 = vcmp.eq.s32.totalorder %v2663_v18, %v1158_v38 }
 0x438   : > { %2081 = vmatpush3.msra.mxu0 %v1432_v34  ;;  %v1714_v51 = vsel %vm1187_vm15, 1.0, %v2359_v59  ;;  %v1713_v53 = vsel %vm1186_vm0, 1.0, %v2359_v59 }
 0x439   : > { %2058 = vmatmul.mubr.msk.f32.gmra.mxu0 %vm1039_vm4, %v1707_v37  ;;  %2082 = vmatprep.subr.mxu0 %v2359_v59 }
 0x43a   : > { %2060 = vmatprep.mubr.msk.f32.mxu0 %vm1039_vm4, %v1708_v35  ;;  %2083 = vmatpush3.msra.mxu0 %v1431_v36  ;;  %v1164_v45 = vpop.permute.xlu0 %1163  ;;  %v1167_v47 = vpop.permute.xlu1 %1166 }
 0x43b   : > { %2084 = vmatprep.subr.mxu0 %v2359_v59  ;;  %vm1189_vm1 = vcmp.eq.s32.totalorder %v2663_v18, %v1167_v47  ;;  %vm1188_vm2 = vcmp.eq.s32.totalorder %v2663_v18, %v1164_v45 }
 0x43c   : > { %2085 = vmatpush3.msra.mxu0 %v1430_v40  ;;  %v1716_v57 = vsel %vm1189_vm1, 1.0, %v2359_v59  ;;  %v1715_v60 = vsel %vm1188_vm2, 1.0, %v2359_v59 }
 0x43d   : > { %2061 = vmatmul.mubr.msk.f32.gmra.mxu0 %vm1039_vm4, %v1709_v43  ;;  %2086 = vmatprep.subr.mxu0 %v2359_v59 }
 0x43e   : > { %2063 = vmatprep.mubr.msk.f32.mxu0 %vm1039_vm4, %v1710_v41  ;;  %2087 = vmatpush3.msra.mxu0 %v1429_v42  ;;  %v1170_v54 = vpop.permute.xlu0 %1169  ;;  %v1173_v55 = vpop.permute.xlu1 %1172 }
 0x43f   : > { %2088 = vmatprep.subr.mxu0 %v2359_v59  ;;  %vm1191_vm5 = vcmp.eq.s32.totalorder %v2663_v18, %v1173_v55  ;;  %vm1190_vm6 = vcmp.eq.s32.totalorder %v2663_v18, %v1170_v54 }
 0x440   : > { %2089 = vmatpush3.msra.mxu0 %v1428_v44  ;;  %v1718_v63 = vsel %vm1191_vm5, 1.0, %v2359_v59  ;;  %v1717_v1 = vsel %vm1190_vm6, 1.0, %v2359_v59 }
 0x441   : > { %2064 = vmatmul.mubr.msk.f32.gmra.mxu0 %vm1039_vm4, %v1711_v49  ;;  %2090 = vmatprep.subr.mxu0 %v2359_v59 }
 0x442   : > { %2066 = vmatprep.mubr.msk.f32.mxu0 %vm1039_vm4, %v1712_v46  ;;  %2091 = vmatpush3.msra.mxu0 %v1427_v48  ;;  %v1176_v62 = vpop.permute.xlu0 %1175 }
 0x443   : > { %2092 = vmatprep.subr.mxu0 %v2359_v59  ;;  %vm1192_vm7 = vcmp.eq.s32.totalorder %v2663_v18, %v1176_v62 }
 0x444   : > { %2093 = vmatpush3.msra.mxu0 %v1426_v50  ;;  %v1719_v4 = vsel %vm1192_vm7, 1.0, %v2359_v59 }
 0x445   : > { %2067 = vmatmul.mubr.msk.f32.gmra.mxu0 %vm1039_vm4, %v1713_v53  ;;  %2094 = vmatprep.subr.mxu0 %v2359_v59 }
 0x446   : > { %2069 = vmatprep.mubr.msk.f32.mxu0 %vm1039_vm4, %v1714_v51  ;;  %2095 = vmatpush3.msra.mxu0 %v1425_v52 }
 0x447   : > { %2096 = vmatprep.subr.mxu0 %v2359_v59 }
 0x448   : > { %2097 = vmatpush3.msra.mxu0 %v1424_v56 }
 0x449   : > { %2070 = vmatmul.mubr.msk.f32.gmra.mxu0 %vm1039_vm4, %v1715_v60  ;;  %2098 = vmatprep.subr.mxu0 %v2359_v59 }
 0x44a   : > { %2072 = vmatprep.mubr.msk.f32.mxu0 %vm1039_vm4, %v1716_v57  ;;  %2099 = vmatpush3.msra.mxu0 %v1423_v58 }
 0x44b   : > { %2100 = vmatprep.subr.mxu0 %v2359_v59 }
 0x44c   : > { %2101 = vmatpush3.msra.mxu0 %v1422_v61 }
 0x44d   : > { %2073 = vmatmul.mubr.msk.f32.gmra.mxu0 %vm1039_vm4, %v1717_v1  ;;  %2102 = vmatprep.subr.mxu0 %v2359_v59 }
 0x44e   : > { %2075 = vmatprep.mubr.msk.f32.mxu0 %vm1039_vm4, %v1718_v63  ;;  %2103 = vmatpush3.msra.mxu0 %v1421_v0 }
 0x44f   : > { %2104 = vmatprep.subr.mxu0 %v2359_v59 }
 0x450   : > { %2105 = vmatpush3.msra.mxu0 %v1420_v2 }
 0x451   : > { %2076 = vmatmul.mubr.msk.f32.gmra.mxu0 %vm1039_vm4, %v1719_v4  ;;  %2106 = vmatprep.subr.mxu0 %v2359_v59 }
 0x452   : > { %2107 = vmatpush3.msra.mxu0 %v1419_v3  ;;  %2110 = vmatprep.mubr.msk.f32.mxu0 %vm2360_vm3, %v2359_v59 }
 0x453   : > { %2108 = vmatprep.subr.mxu0 %v2359_v59 }
 0x454   : > { %2109 = vmatpush3.msra.mxu0 %v1418_v5 }
 0x4e5   : > { %v1109_v6 = vpop.f32.mrf.mxu0 }
 0x4e6   : > { %2111 = vmatmul.mubr.f32.vlgmr.msra.gmra.mxu0 %v1109_v6 }
 0x4e7   : > { %v2037_v7 = vpop.f32.mrf.mxu0 }
 0x4f5   : > { %v2056_v8 = vpop.f32.mrf.mxu0 }
 0x4f7   : > { %v1339_v9 = vpop.f32.mrf.mxu0 }
 0x4f9   : > { %v2059_v10 = vpop.f32.mrf.mxu0 }
 0x4fb   : > { %v1349_v11 = vpop.f32.mrf.mxu0 }
 0x4fd   : > { %v2062_v12 = vpop.f32.mrf.mxu0 }
 0x4ff   : > { %v1359_v13 = vpop.f32.mrf.mxu0 }
 0x501   : > { %v2065_v14 = vpop.f32.mrf.mxu0 }
 0x503   : > { %v1369_v15 = vpop.f32.mrf.mxu0 }
 0x505   : > { %v2068_v16 = vpop.f32.mrf.mxu0 }
 0x507   : > { %v1379_v17 = vpop.f32.mrf.mxu0 }
 0x509   : > { %v2071_v18 = vpop.f32.mrf.mxu0 }
 0x50b   : > { %v1389_v19 = vpop.f32.mrf.mxu0 }
 0x50d   : > { %v2074_v20 = vpop.f32.mrf.mxu0 }
 0x50f   : > { %v1399_v21 = vpop.f32.mrf.mxu0 }
 0x511   : > { %v2077_v22 = vpop.f32.mrf.mxu0 }
 0x512   : > { %2114 = vmatpush3.xpose.msra.mxu1 %v2077_v22 }
 0x513   : > { %2115 = vmatprep.subr.mxu1 %v2359_v59  ;;  %v1409_v23 = vpop.f32.mrf.mxu0 }
 0x516   : > { %2116 = vmatpush3.xpose.msra.mxu1 %v1409_v23 }
 0x517   : > { %2117 = vmatprep.subr.mxu1 %v2359_v59 }
 0x51a   : > { %2118 = vmatpush3.xpose.msra.mxu1 %v2074_v20 }
 0x51b   : > { %2119 = vmatprep.subr.mxu1 %v2359_v59 }
 0x51e   : > { %2120 = vmatpush3.xpose.msra.mxu1 %v1399_v21 }
 0x51f   : > { %2121 = vmatprep.subr.mxu1 %v2359_v59 }
 0x522   : > { %2122 = vmatpush3.xpose.msra.mxu1 %v2071_v18 }
 0x523   : > { %2123 = vmatprep.subr.mxu1 %v2359_v59 }
 0x526   : > { %2124 = vmatpush3.xpose.msra.mxu1 %v1389_v19 }
 0x527   : > { %2125 = vmatprep.subr.mxu1 %v2359_v59 }
 0x52a   : > { %2126 = vmatpush3.xpose.msra.mxu1 %v2068_v16 }
 0x52b   : > { %2127 = vmatprep.subr.mxu1 %v2359_v59 }
 0x52e   : > { %2128 = vmatpush3.xpose.msra.mxu1 %v1379_v17 }
 0x52f   : > { %2129 = vmatprep.subr.mxu1 %v2359_v59 }
 0x532   : > { %2130 = vmatpush3.xpose.msra.mxu1 %v2065_v14 }
 0x533   : > { %2131 = vmatprep.subr.mxu1 %v2359_v59 }
 0x536   : > { %2132 = vmatpush3.xpose.msra.mxu1 %v1369_v15 }
 0x537   : > { %2133 = vmatprep.subr.mxu1 %v2359_v59 }
 0x53a   : > { %2134 = vmatpush3.xpose.msra.mxu1 %v2062_v12 }
 0x53b   : > { %2135 = vmatprep.subr.mxu1 %v2359_v59 }
 0x53e   : > { %2136 = vmatpush3.xpose.msra.mxu1 %v1359_v13 }
 0x53f   : > { %2137 = vmatprep.subr.mxu1 %v2359_v59 }
 0x542   : > { %2138 = vmatpush3.xpose.msra.mxu1 %v2059_v10 }
 0x543   : > { %2139 = vmatprep.subr.mxu1 %v2359_v59 }
 0x546   : > { %2140 = vmatpush3.xpose.msra.mxu1 %v1349_v11 }
 0x547   : > { %2141 = vmatprep.subr.mxu1 %v2359_v59 }
 0x54a   : > { %2142 = vmatpush3.xpose.msra.mxu1 %v2056_v8 }
 0x54b   : > { %2143 = vmatprep.subr.mxu1 %v2359_v59 }
 0x54e   : > { %2144 = vmatpush3.xpose.msra.mxu1 %v1339_v9 }
 0x5a6   : > { %v1500_v24 = vpop.f32.mrf.mxu0 }
 0x5a7   : > { %2146 = vmatmul.mubr.f32.vlgmr.msra.gmra.mxu1 %v1500_v24 }
 0x5a8   : > { %v2112_v25 = vpop.f32.mrf.mxu0 }
 0x667   : > { %v1570_v26 = vpop.f32.mrf.mxu1 }
 0x668   : > { %v1574_v27 = vsub.f32 0.0, %v1570_v26 }
 0x669   : > { %v2147_v28 = vpop.f32.mrf.mxu1 }
 0x66a   : > { %v1575_v29 = vmul.f32 1.442695, %v1574_v27 }
 0x66c   : > { %2269 = vpow2.f32 %v1575_v29 }
 0x679   : > { %v2270_v30 = vpop.eup %2269 }
 0x67a   : > { %v1577_v31 = vadd.f32 1.0, %v2270_v30 }
 0x67c   : > { %2271 = vrcp.f32 %v1577_v31 }
 0x689   : > { %v2272_v32 = vpop.eup %2271 }
 0x68a   : > { %1579 = vst [vmem:[#allocation7] sm:$0xff] %v2272_v32 }
 0x68b PF: > { %p2753_p5 = scmp.eq.s32.totalorder %s1643_s12, 1  ;;  %s2361_s20 = smov [#allocation7]  }
 0x68c   : > { %s1587_s21 = sshll.u32 %s2361_s20, 4  ;;  %s1588_s21 = int_to_ptr.vmem [resolvable:$true] %s1587_s21 }
 0x68d   : > { %s2299_s22 = scalar_lea.vmem %s1588_s21, 128  ;;  %p2306_p9 = scmp.lt.s32.totalorder %s1588_s21, %s1588_s21 }
 0x68e   : > { %p2300_p6 = scmp.ne.s32.totalorder %s1588_s21, %s2299_s22  ;;  %p2307_p10 = scmp.lt.s32.totalorder %s2299_s22, %s2299_s22 }
 0x690   : > { %p2301_p7 = pnand %p2300_p6, %p2753_p5  ;;  %p2308_p11 = por %p2307_p10, %p2306_p9 }
 0x692   : > { %p2302_p8 = pneg %p2301_p7 }
 0x694   : > { %p2309_p12 = pnand %p2308_p11, %p2302_p8 }
 0x696   : > { %2312 = shalt.err (!%p2309_p12)
}
 0x697   : > { %2209 = dma.vmem_to_hbm [thread:$0]  (%p2753_p5), %s1588_s21, 128, %s2786_s9, [#allocation6]  }
 0x698   : > { %2340 = dma.done.wait (%p2753_p5), [#allocation6], 128  }
 0x699   : > { %2342 = vsyncadd (%p2753_p5), [#allocation6], 4294967168 }
 0x69a PF: > { %s21_s11 = sadd.s32 1, %s2353_s11   ;;  %s2790_s30 = smov %s2349_s10 }
 0x69b   : > { %p18_p13 = scmp.ge.s32.totalorder %s21_s11, 4   ;;  %s2791_s10 = smov %s2793_s13 }
 0x69d   :  { %20 = sbr.rel (!%p18_p13) target bundleno = 3 (0x3), region = 109 }
 0x6a2   :  { %1600 = vsyncpa [#allocation5], 1 }
 0x6a3   :  { %1602 = vsyncpa [#allocation5 + $0x1], 1 }
 0x6a4   :  { %1603 = vsyncpa [#allocation6], 1 }
 0x6a5   :  { %1605 = vsyncpa [#allocation6 + $0x1], 1 }

</bundles_post_ra>
